<compile_context>
chip_gen: v7x
topology: tpu7x:2x2x1
jax: 0.10.0
libtpu: 0.0.40
codegen_flags: <defaults>
</compile_context>

<pallas_src>
import functools

import jax
import jax.numpy as jnp
from jax.experimental import pallas as pl
from jax.experimental.pallas import tpu as pltpu

_ROW_ALIGN = 16                   # multiple of 16 keeps bf16 (16,128) tiling legal
_TARGET_BLOCK_ELEMS = 1 << 20     # ~1M elems / operand block: 4 MiB f32, 2 MiB bf16
_VMEM_LIMIT = 32 * 1024 * 1024    # <= scoped limit on every generation incl. v7x


def _split_kernel(x1_ref, x2_ref, o_ref):
    # x1/x2 are the two halves of x, delivered by two BlockSpecs over the SAME
    # HBM array (column blocks 0 and 1) -> no wrapper-side chunk copy, and the
    # total HBM read is still exactly one pass over x.
    x1 = x1_ref[...].astype(jnp.float32)
    x2 = x2_ref[...].astype(jnp.float32)
    s = x1 + x2
    # Same semantics as torch.log(1 + torch.exp(s)) in the reference module
    # (unstabilized, like the original; log1p is marginally more accurate).
    o_ref[...] = (x1 * x2 * jnp.log1p(jnp.exp(s))).astype(o_ref.dtype)


def _fused_kernel(x_ref, o_ref, *, half):
    # Fallback (half % 128 != 0): full-D input block, static lane slices of the
    # loaded value. Used only for small / non-lane-aligned hidden dims.
    x = x_ref[...].astype(jnp.float32)
    x1 = x[:, :half]
    x2 = x[:, half:]
    s = x1 + x2
    o_ref[...] = (x1 * x2 * jnp.log1p(jnp.exp(s))).astype(o_ref.dtype)


def _choose_tile_rows(rows, half):
    """Row tile: ~1M elems per operand block, multiple of 16, >=2 grid blocks
    whenever there is enough work (so v7x's two TensorCores both shard)."""
    tile_r = min(rows, max(_ROW_ALIGN, _TARGET_BLOCK_ELEMS // max(half, 1)))
    if tile_r < _ROW_ALIGN:
        return rows                            # tiny input: single full-extent block
    tile_r = (tile_r // _ROW_ALIGN) * _ROW_ALIGN
    if tile_r >= rows and rows >= 2 * _ROW_ALIGN:
        # Split into (at least) 2 blocks for the parallel axis.
        tile_r = ((rows + 1) // 2 + _ROW_ALIGN - 1) // _ROW_ALIGN * _ROW_ALIGN
    return tile_r


def gated_mish(x):
    """Gated Mish over the last axis. x: (..., D) with D even -> (..., D//2)."""
    D = x.shape[-1]
    if D % 2 != 0:
        raise ValueError("last dim must be even (chunk into 2)")
    half = D // 2
    out_shape = x.shape[:-1] + (half,)

    rows = 1
    for d in x.shape[:-1]:
        rows *= d
    rows = max(rows, 1)

    x2d = x.reshape(rows, D)                   # free reshape (no copy)
    tile_r = _choose_tile_rows(rows, half)
    grid = (pl.cdiv(rows, tile_r),)            # ragged edge block masked by Pallas
    cparams = pltpu.CompilerParams(
        dimension_semantics=("parallel",),
        vmem_limit_bytes=_VMEM_LIMIT,
    )

    if half % 128 == 0:
        # Lane-dense path: chunk happens in the BlockSpec column index; output
        # is written directly as (rows, half) -> wide unmasked stores.
        out2d = pl.pallas_call(
            _split_kernel,
            out_shape=jax.ShapeDtypeStruct((rows, half), x.dtype),
            grid=grid,
            in_specs=[
                pl.BlockSpec((tile_r, half), lambda i: (i, 0)),   # x[:, :half]
                pl.BlockSpec((tile_r, half), lambda i: (i, 1)),   # x[:, half:]
            ],
            out_specs=pl.BlockSpec((tile_r, half), lambda i: (i, 0)),
            compiler_params=cparams,
        )(x2d, x2d)
    else:
        # Fallback for narrow / non-128-aligned halves (e.g. hidden=32).
        out2d = pl.pallas_call(
            functools.partial(_fused_kernel, half=half),
            out_shape=jax.ShapeDtypeStruct((rows, half), x.dtype),
            grid=grid,
            in_specs=[pl.BlockSpec((tile_r, D), lambda i: (i, 0))],
            out_specs=pl.BlockSpec((tile_r, half), lambda i: (i, 0)),
            compiler_params=cparams,
        )(x2d)

    return out2d.reshape(out_shape)            # free reshape back


def _reference(x):
    half = x.shape[-1] // 2
    x1 = x[..., :half]
    x2 = x[..., half:]
    return x1 * x2 * jnp.log1p(jnp.exp(x1 + x2))


if __name__ == "__main__":
    key = jax.random.PRNGKey(0)
    k1, k2, k3 = jax.random.split(key, 3)

    # Small shape consistent with the module: (batch=2, seq=8, hidden=32) -> (2, 8, 16).
    # Exercises the fallback (half=16, not a multiple of 128) path.
    x_small = jax.random.normal(k1, (2, 8, 32), dtype=jnp.float32)
    out_small = jax.block_until_ready(gated_mish(x_small))
    assert out_small.shape == (2, 8, 16), out_small.shape
    assert jnp.allclose(out_small, _reference(x_small), atol=1e-5, rtol=1e-5), "small mismatch"

    # Lane-dense path (half=128) with a ragged row edge (rows=120, tile=112, grid=2).
    x_mid = jax.random.normal(k2, (2, 60, 256), dtype=jnp.float32)
    out_mid = jax.block_until_ready(gated_mish(x_mid))
    assert out_mid.shape == (2, 60, 128), out_mid.shape
    assert jnp.allclose(out_mid, _reference(x_mid), atol=1e-5, rtol=1e-5), "mid mismatch"

    # bf16 input: bf16 HBM traffic, f32 compute in VMEM, 2-block parallel grid.
    x_bf16 = jax.random.normal(k3, (4, 64, 512), dtype=jnp.bfloat16)
    out_bf16 = jax.block_until_ready(gated_mish(x_bf16))
    ref_bf16 = _reference(x_bf16.astype(jnp.float32))
    assert out_bf16.shape == (4, 64, 256), out_bf16.shape
    assert jnp.allclose(out_bf16.astype(jnp.float32), ref_bf16, atol=3e-2, rtol=3e-2), "bf16 mismatch"

    print("KERNEL_OK")
</pallas_src>

<mosaic_0001>
module attributes {stable_mosaic.version = 11 : i64} {
  func.func @_fused_kernel(%arg0: i32, %arg1: memref<16x32xf32, #tpu.memory_space<vmem>>, %arg2: memref<16x16xf32, #tpu.memory_space<vmem>>) attributes {dimension_semantics = [#tpu.dimension_semantics<parallel>], iteration_bounds = array<i64: 1>, scalar_prefetch = 0 : i64, scratch_operands = 0 : i64, tpu.core_type = #tpu.core_type<tc>, window_params = [{transform_indices = @transform_0, window_bounds = array<i64: 16, 32>}, {transform_indices = @transform_1, window_bounds = array<i64: 16, 16>}]} {
    %c0 = arith.constant 0 : index
    %c0_0 = arith.constant 0 : index
    %0 = vector.load %arg1[%c0, %c0_0] : memref<16x32xf32, #tpu.memory_space<vmem>>, vector<16x32xf32>
    %1 = vector.extract_strided_slice %0 {offsets = [0, 0], sizes = [16, 16], strides = [1, 1]} : vector<16x32xf32> to vector<16x16xf32>
    %2 = vector.extract_strided_slice %0 {offsets = [0, 16], sizes = [16, 16], strides = [1, 1]} : vector<16x32xf32> to vector<16x16xf32>
    %3 = arith.addf %1, %2 : vector<16x16xf32>
    %4 = arith.mulf %1, %2 : vector<16x16xf32>
    %5 = math.exp %3 : vector<16x16xf32>
    %6 = math.log1p %5 : vector<16x16xf32>
    %7 = arith.mulf %4, %6 : vector<16x16xf32>
    %c0_1 = arith.constant 0 : index
    %c0_2 = arith.constant 0 : index
    %8 = vector.load %arg2[%c0_1, %c0_2] : memref<16x16xf32, #tpu.memory_space<vmem>>, vector<16x16xf32>
    tpu.vector_store %arg2[%c0_1, %c0_2], %7 {strides = array<i32>} : memref<16x16xf32, #tpu.memory_space<vmem>>, vector<16x16xf32>,
    return
  }
  func.func @transform_0(%arg0: i32) -> (i32, i32) {
    %c0_i32 = arith.constant 0 : i32
    %c0_i32_0 = arith.constant 0 : i32
    return %arg0, %c0_i32 : i32, i32
  }
  func.func @transform_1(%arg0: i32) -> (i32, i32) {
    %c0_i32 = arith.constant 0 : i32
    %c0_i32_0 = arith.constant 0 : i32
    return %arg0, %c0_i32 : i32, i32
  }
}

</mosaic_0001>

<bundles_post_ra>
// kernel: tpu_custom_call.1
= control target key start
LH: loop header
LB: loop body
LE: loop exit
PB: predicated region body
PF: predicated region fallthrough
CT: control target
= control target key end

     0   :  { %6 = vsyncpa [#allocation3], 0  ;;  %s187_s0 = inlined_call_operand.hbm [shape: f32[16,32], index: 0, kind: input, shape index: {}]   ;;  %s188_s1 = inlined_call_operand.hbm [shape: f32[16,16], index: 1, kind: output, shape index: {}]  }
   0x1   :  { %7 = vsyncpa [#allocation4], 0  ;;  %s142_s6 = smov [#allocation2]   ;;  %s94_s10 = scalar_lea.hbm %s187_s0, 256 }
   0x2   :  { %s13_s7 = sshll.u32 %s142_s6, 4  ;;  %p95_p0 = scmp.ne.s32.totalorder %s187_s0, %s94_s10  ;;  %s14_s7 = int_to_ptr.vmem [resolvable:$true] %s13_s7 }
   0x3   :  { %p98_p1 = scmp.lt.u32.totalorder %s94_s10, %s187_s0 }
   0x5   :  { %p100_p2 = pnand %p98_p1, %p95_p0 }
   0x7   :  { %103 = shalt.err (!%p100_p2)
}
   0x8   :  { %s104_s15 = scalar_lea.vmem %s14_s7, 256  ;;  %p109_p4 = scmp.lt.s32.totalorder %s14_s7, %s14_s7 }
   0x9   :  { %p105_p3 = scmp.ne.s32.totalorder %s14_s7, %s104_s15  ;;  %p110_p5 = scmp.lt.s32.totalorder %s104_s15, %s104_s15 }
   0xb   :  { %p111_p6 = por %p110_p5, %p109_p4 }
   0xd   :  { %p112_p7 = pnand %p111_p6, %p105_p3 }
   0xf   :  { %115 = shalt.err (!%p112_p7)
}
  0x10   :  { %s143_s16 = smov 128   ;;  %s144_s17 = smov 8  }
  0x11   :  { %19 = dma.hbm_to_vmem [thread:$0]  %s187_s0, 256, %s14_s7, [#allocation3], %s143_s16, %s143_s16, %s144_s17  }
  0x12   :  { %138 = dma.done.wait [#allocation3], 256  }
  0x13   :  { %139 = vsyncadd [#allocation3], 4294967040  ;;  %v23_v0 = vld [vmem:[#allocation2] sm:$0xff]  ;;  %s145_s20 = smov 112   ;;  %v24_v1 = vld [vmem:[#allocation2 + $0x8] sm:$0xff]  ;;  %vm61_vm1 = vcmask 130048  }
  0x14   :  { %27 = vrot.lane.b32.xlu0 %v23_v0, %s145_s20  ;;  %s146_s0 = smov [#allocation5]  }
  0x15   :  { %s69_s21 = sshll.u32 %s146_s0, 4  ;;  %s70_s21 = int_to_ptr.vmem [resolvable:$true] %s69_s21 }
  0x16   :  { %s116_s22 = scalar_lea.vmem %s70_s21, 256  ;;  %p121_p9 = scmp.lt.s32.totalorder %s70_s21, %s70_s21 }
  0x17   :  { %p117_p8 = scmp.ne.s32.totalorder %s70_s21, %s116_s22  ;;  %p122_p10 = scmp.lt.s32.totalorder %s116_s22, %s116_s22 }
  0x18   :  { %29 = vrot.lane.b32.xlu0 %v24_v1, %s145_s20 }
  0x19   :  { %p123_p11 = por %p122_p10, %p121_p9 }
  0x1b   :  { %p124_p12 = pnand %p123_p11, %p117_p8 }
  0x86   :  { %v28_v2 = vpop.permute.xlu0 %27 }
  0x87   :  { %v33_v3 = vadd.f32 %v28_v2, %v23_v0  ;;  %v35_v20 = vmul.f32 %v28_v2, %v23_v0 }
  0x89   :  { %v37_v4 = vmul.f32 1.442695, %v33_v3 }
  0x8a   :  { %v30_v5 = vpop.permute.xlu0 %29 }
  0x8b   :  { %86 = vpow2.f32 %v37_v4  ;;  %v34_v6 = vadd.f32 %v30_v5, %v24_v1  ;;  %v36_v27 = vmul.f32 %v30_v5, %v24_v1 }
  0x8d   :  { %v39_v7 = vmul.f32 1.442695, %v34_v6 }
  0x8f   :  { %88 = vpow2.f32 %v39_v7 }
  0x95   :  { %v87_v8 = vpop.eup %86 }
  0x96   :  { %v41_v9 = vadd.f32 1.0, %v87_v8  ;;  %v44_v12 = vmul.f32 -0.5, %v87_v8  ;;  %v47_v15 = vand.u32 2147483647, %v87_v8 }
  0x98   :  { %90 = vlog2.f32 %v41_v9  ;;  %v45_v13 = vadd.f32 1.0, %v44_v12  ;;  %vm48_vm0 = vcmp.lt.f32.partialorder %v47_v15, 0.0004427343 }
  0x99   :  { %v89_v10 = vpop.eup %88 }
  0x9a   :  { %v50_v11 = vadd.f32 1.0, %v89_v10  ;;  %v53_v14 = vmul.f32 -0.5, %v89_v10  ;;  %v46_v18 = vmul.f32 %v87_v8, %v45_v13  ;;  %v56_v21 = vand.u32 2147483647, %v89_v10 }
  0x9c   :  { %92 = vlog2.f32 %v50_v11  ;;  %v54_v19 = vadd.f32 1.0, %v53_v14  ;;  %vm57_vm2 = vcmp.lt.f32.partialorder %v56_v21, 0.0004427343 }
  0x9e   :  { %v55_v26 = vmul.f32 %v89_v10, %v54_v19 }
  0xa2   :  { %v91_v16 = vpop.eup %90 }
  0xa3   :  { %v43_v17 = vmul.f32 0.6931472, %v91_v16 }
  0xa5   :  { %v49_v22 = vsel %vm48_vm0, %v46_v18, %v43_v17 }
  0xa6   :  { %v93_v23 = vpop.eup %92  ;;  %v59_v24 = vmul.f32 %v49_v22, %v35_v20 }
  0xa7   :  { %v52_v25 = vmul.f32 0.6931472, %v93_v23 }
  0xa8   :  { %62 = vst.msk [vmem:[#allocation5] sm:$0xff] %vm61_vm1, %v59_v24 }
  0xa9   :  { %v58_v28 = vsel %vm57_vm2, %v55_v26, %v52_v25 }
  0xaa   :  { %v60_v29 = vmul.f32 %v58_v28, %v36_v27 }
  0xac   :  { %63 = vst.msk [vmem:[#allocation5 + $0x8] sm:$0xff] %vm61_vm1, %v60_v29 }
  0xad   :  { %127 = shalt.err (!%p124_p12)
}
  0xae   :  { %s128_s25 = scalar_lea.hbm %s188_s1, 256 }
  0xaf   :  { %p129_p13 = scmp.ne.s32.totalorder %s188_s1, %s128_s25  ;;  %p132_p0 = scmp.lt.u32.totalorder %s128_s25, %s188_s1 }
  0xb1   :  { %p134_p1 = pnand %p132_p0, %p129_p13 }
  0xb3   :  { %137 = shalt.err (!%p134_p1)
}
  0xb4   :  { %75 = dma.vmem_to_hbm [thread:$0]  %s70_s21, 256, %s188_s1, [#allocation4], %s143_s16, %s143_s16, %s144_s17  }
  0xb5   :  { %140 = dma.done.wait [#allocation4], 256  }
  0xb6   :  { %141 = vsyncadd [#allocation4], 4294967040 }
  0xb7   :  { %79 = vsyncpa [#allocation3], 1 }
  0xb8   :  { %80 = vsyncpa [#allocation4], 1 }

</bundles_post_ra>
